<compile_context>
chip_gen: v7x
topology: tpu7x:2x2x1
jax: 0.10.0
libtpu: 0.0.40
codegen_flags: <defaults>
</compile_context>

<pallas_src>
import jax
import jax.numpy as jnp
from jax.experimental import pallas as pl
from jax.experimental.pallas import tpu as pltpu


SELU_ALPHA = 1.6732632423543772
SELU_SCALE = 1.0507009873554804


def _round_up(x, m):
    return ((x + m - 1) // m) * m


def _vmem_capacity_bytes():
    """Per-TensorCore VMEM capacity; conservative 64 MiB (v7x) fallback."""
    try:
        info = pltpu.get_tpu_info()
        cap = getattr(info, "vmem_capacity_bytes", None)
        if cap:
            return int(cap)
    except Exception:
        pass
    return 64 << 20


def _pick_tile(B, C, H, act_bytes, out_bytes, vmem_cap):
    """Row-tile: as large as the VMEM budget allows (cap 1024), but keep
    >= 8 grid steps on big batches so both v7x TensorCores stay fed and the
    prefetch(i+1)/writeback(i-1) pipeline survives."""
    per_row = 2 * 3 * (C * act_bytes + H * out_bytes)   # 2-deep, 3 ins + 3 outs
    weight_bytes = C * H * 2 + H * 4                    # resident bf16 W + f32 b
    budget = int(vmem_cap * 0.6) - weight_bytes         # leave compiler headroom
    tm_vmem = max(8, ((budget // per_row) // 8) * 8) if budget > 0 else 8
    tm = min(_round_up(B, 8), min(1024, tm_vmem))
    # Prefer >= 8 tiles (>= 4 per v7x TC) before maxing tile size, but never
    # drop below 256 rows (HBM-roofline knee) or a single tiny-batch block.
    min_tm = min(256, _round_up(B, 8))
    while tm > min_tm and pl.cdiv(B, tm) < 8:
        tm = max(min_tm, _round_up(tm // 2, 8))
    return tm


def _hashnet_kernel(x1_ref, x2_ref, y_ref, w_ref, b_ref,
                    o1_ref, o2_ref, o3_ref):
    # x*_ref: (tm, C)   w_ref: (C, H) bf16   b_ref: (1, H) f32   o*_ref: (tm, H)
    w = w_ref[...]          # resident across grid steps (constant index_map)
    b = b_ref[...]

    def one(x_ref, o_ref):
        x = x_ref[...].astype(jnp.float32)
        # Softmax over the feature axis (dim=1 in the PyTorch module).
        m = jnp.max(x, axis=-1, keepdims=True)
        e = jnp.exp(x - m)
        inv_sum = pl.reciprocal(jnp.sum(e, axis=-1, keepdims=True), approx=True)
        # Normalization deferred past the matmul (linear in rows):
        #   (e / sum_e) @ W == (e @ W) * inv_sum
        z = jnp.dot(e.astype(jnp.bfloat16), w,
                    preferred_element_type=jnp.float32)
        z = z * inv_sum + b
        # SELU (clamp before exp so the discarded branch never produces inf).
        z_neg = jnp.minimum(z, 0.0)
        o_ref[...] = (SELU_SCALE *
                      jnp.where(z > 0.0, z,
                                SELU_ALPHA * (jnp.exp(z_neg) - 1.0))
                      ).astype(o_ref.dtype)

    one(x1_ref, o1_ref)
    one(x2_ref, o2_ref)
    one(y_ref, o3_ref)


def prepare_params(w, b):
    """One-time parameter staging (call at init, NOT per forward):
    nn.Linear weight (H, C) -> pre-transposed bf16 (C, H); bias -> (1, H) f32."""
    return jnp.transpose(w).astype(jnp.bfloat16), b.reshape(1, -1).astype(jnp.float32)


def hashnet_forward(x1, x2, y, w_t, b2, *, tm=None, out_dtype=None):
    """HashNet.forward: (x1, x2, y) -> softmax -> fc -> SELU for each input.

    w_t: (C, H) bf16 pre-transposed weight; b2: (1, H) f32 bias
    (from prepare_params).  Returns three (B, H) arrays of `out_dtype`
    (defaults to the activation dtype; pass bf16 activations/out_dtype to
    halve HBM traffic if downstream tolerates it)."""
    B, C = x1.shape
    Cw, H = w_t.shape
    assert C == Cw, "weight / activation feature mismatch"
    out_dtype = out_dtype or x1.dtype

    act_bytes = jnp.dtype(x1.dtype).itemsize
    out_bytes = jnp.dtype(out_dtype).itemsize
    vmem_cap = _vmem_capacity_bytes()

    if tm is None:
        tm = _pick_tile(B, C, H, act_bytes, out_bytes, vmem_cap)
    tm = max(8, _round_up(tm, 8))
    # Ragged last block: no host-side pad, Pallas masks the partial write-back.
    num_tiles = pl.cdiv(B, tm)

    act_spec = pl.BlockSpec((tm, C), lambda i: (i, 0))
    out_spec = pl.BlockSpec((tm, H), lambda i: (i, 0))

    # VMEM budget: double-buffered activation/output tiles + resident weight.
    block_bytes = (2 * 3 * tm * C * act_bytes      # 3 input tiles, 2-deep
                   + 2 * 3 * tm * H * out_bytes    # 3 output tiles, 2-deep
                   + C * H * 2 + H * 4)            # bf16 weight + f32 bias
    vmem_limit = int(min(max(block_bytes + (8 << 20), 32 << 20),
                         max(32 << 20, (vmem_cap * 3) // 4)))

    cost = pl.CostEstimate(
        flops=2 * 3 * B * C * H,
        transcendentals=3 * B * (C + H),
        bytes_accessed=(3 * B * C * act_bytes + C * H * 2 + H * 4
                        + 3 * B * H * out_bytes),
    )

    o1, o2, o3 = pl.pallas_call(
        _hashnet_kernel,
        out_shape=tuple(jax.ShapeDtypeStruct((B, H), out_dtype) for _ in range(3)),
        grid_spec=pltpu.PrefetchScalarGridSpec(
            num_scalar_prefetch=0,
            grid=(num_tiles,),
            in_specs=[act_spec, act_spec, act_spec,
                      pl.BlockSpec((C, H), lambda i: (0, 0)),
                      pl.BlockSpec((1, H), lambda i: (0, 0))],
            out_specs=[out_spec, out_spec, out_spec],
        ),
        compiler_params=pltpu.CompilerParams(
            dimension_semantics=("parallel",),
            vmem_limit_bytes=vmem_limit),
        cost_estimate=cost,
    )(x1, x2, y, w_t, b2)
    return o1, o2, o3


def _reference(x, w, b):
    # Pure-JAX f32 reference for sanity check.
    p = jax.nn.softmax(x, axis=1)
    z = p @ w.T + b
    return SELU_SCALE * jnp.where(z > 0, z, SELU_ALPHA * jnp.expm1(z))


if __name__ == "__main__":
    # Small shapes consistent with the module (in_channel -> hashLength linear).
    B, C, H = 8, 256, 128

    key = jax.random.PRNGKey(0)
    k_w, k_x1, k_x2, k_y = jax.random.split(key, 4)

    # Deterministic parameter init mirroring HashNet.initLinear():
    #   weight ~ N(1.0, 0.33), bias = 0.1
    w = 1.0 + 0.33 * jax.random.normal(k_w, (H, C), dtype=jnp.float32)
    b = jnp.full((H,), 0.1, dtype=jnp.float32)

    x1 = jax.random.normal(k_x1, (B, C), dtype=jnp.float32)
    x2 = jax.random.normal(k_x2, (B, C), dtype=jnp.float32)
    y = jax.random.normal(k_y, (B, C), dtype=jnp.float32)

    # One-time parameter staging (transpose + bf16 cast hoisted out of forward).
    w_t, b2 = prepare_params(w, b)

    o1, o2, o3 = hashnet_forward(x1, x2, y, w_t, b2)
    jax.block_until_ready((o1, o2, o3))

    # Correctness check against pure-JAX f32 reference (tolerance loosened for
    # bf16 MXU inputs + approx reciprocal).
    for got, inp in ((o1, x1), (o2, x2), (o3, y)):
        ref = _reference(inp, w, b)
        assert jnp.allclose(got, ref, atol=2e-2, rtol=2e-2), "mismatch vs reference"

    print("KERNEL_OK")
</pallas_src>

<mosaic_0001>
module attributes {stable_mosaic.version = 11 : i64} {
  func.func @_hashnet_kernel(%arg0: i32, %arg1: memref<8x256xf32, #tpu.memory_space<vmem>>, %arg2: memref<8x256xf32, #tpu.memory_space<vmem>>, %arg3: memref<8x256xf32, #tpu.memory_space<vmem>>, %arg4: memref<256x128xbf16, #tpu.memory_space<vmem>>, %arg5: memref<1x128xf32, #tpu.memory_space<vmem>>, %arg6: memref<8x128xf32, #tpu.memory_space<vmem>>, %arg7: memref<8x128xf32, #tpu.memory_space<vmem>>, %arg8: memref<8x128xf32, #tpu.memory_space<vmem>>) attributes {dimension_semantics = [#tpu.dimension_semantics<parallel>], iteration_bounds = array<i64: 1>, scalar_prefetch = 0 : i64, scratch_operands = 0 : i64, tpu.core_type = #tpu.core_type<tc>, window_params = [{transform_indices = @transform_0, window_bounds = array<i64: 8, 256>}, {transform_indices = @transform_1, window_bounds = array<i64: 8, 256>}, {transform_indices = @transform_2, window_bounds = array<i64: 8, 256>}, {pipeline_mode = #tpu.pipeline_mode<synchronous>, transform_indices = @transform_3, window_bounds = array<i64: 256, 128>}, {pipeline_mode = #tpu.pipeline_mode<synchronous>, transform_indices = @transform_4, window_bounds = array<i64: 1, 128>}, {transform_indices = @transform_5, window_bounds = array<i64: 8, 128>}, {transform_indices = @transform_6, window_bounds = array<i64: 8, 128>}, {transform_indices = @transform_7, window_bounds = array<i64: 8, 128>}]} {
    %c0 = arith.constant 0 : index
    %c0_0 = arith.constant 0 : index
    %0 = vector.load %arg4[%c0, %c0_0] : memref<256x128xbf16, #tpu.memory_space<vmem>>, vector<256x128xbf16>
    %c0_1 = arith.constant 0 : index
    %c0_2 = arith.constant 0 : index
    %1 = vector.load %arg5[%c0_1, %c0_2] : memref<1x128xf32, #tpu.memory_space<vmem>>, vector<1x128xf32>
    %c0_3 = arith.constant 0 : index
    %c0_4 = arith.constant 0 : index
    %2 = vector.load %arg1[%c0_3, %c0_4] : memref<8x256xf32, #tpu.memory_space<vmem>>, vector<8x256xf32>
    %cst = arith.constant dense<0xFF800000> : vector<8xf32>
    %3 = vector.multi_reduction <maximumf>, %2, %cst [1] : vector<8x256xf32> to vector<8xf32>
    %4 = vector.shape_cast %3 : vector<8xf32> to vector<8x1xf32>
    %5 = vector.broadcast %4 : vector<8x1xf32> to vector<8x256xf32>
    %6 = arith.subf %2, %5 : vector<8x256xf32>
    %7 = math.exp %6 : vector<8x256xf32>
    %cst_5 = arith.constant dense<0.000000e+00> : vector<8xf32>
    %8 = vector.multi_reduction <add>, %7, %cst_5 [1] : vector<8x256xf32> to vector<8xf32>
    %9 = vector.shape_cast %8 : vector<8xf32> to vector<8x1xf32>
    %10 = tpu.reciprocal %9 {approx = true} : vector<8x1xf32> -> vector<8x1xf32>
    %11 = arith.truncf %7 : vector<8x256xf32> to vector<8x256xbf16>
    %cst_6 = arith.constant dense<0.000000e+00> : vector<8x128xf32>
    %12 = tpu.matmul %11, %0, %cst_6 {dimension_numbers = #tpu.dot_dimension_numbers<[1], [0], [0], [1], [0, 0, 1, 1], [], []>} : vector<8x256xbf16>, vector<256x128xbf16>, vector<8x128xf32> -> vector<8x128xf32>
    %13 = vector.broadcast %10 : vector<8x1xf32> to vector<8x128xf32>
    %14 = arith.mulf %12, %13 : vector<8x128xf32>
    %15 = vector.broadcast %1 : vector<1x128xf32> to vector<8x128xf32>
    %16 = arith.addf %14, %15 : vector<8x128xf32>
    %cst_7 = arith.constant 0.000000e+00 : f32
    %17 = vector.broadcast %cst_7 : f32 to vector<8x128xf32>
    %18 = arith.minimumf %16, %17 : vector<8x128xf32>
    %cst_8 = arith.constant 0.000000e+00 : f32
    %19 = vector.broadcast %cst_8 : f32 to vector<8x128xf32>
    %20 = arith.cmpf ogt, %16, %19 : vector<8x128xf32>
    %21 = math.exp %18 : vector<8x128xf32>
    %cst_9 = arith.constant 1.000000e+00 : f32
    %22 = vector.broadcast %cst_9 : f32 to vector<8x128xf32>
    %23 = arith.subf %21, %22 : vector<8x128xf32>
    %cst_10 = arith.constant 1.67326319 : f32
    %24 = vector.broadcast %cst_10 : f32 to vector<8x128xf32>
    %25 = arith.mulf %24, %23 : vector<8x128xf32>
    %26 = arith.select %20, %16, %25 : vector<8x128xi1>, vector<8x128xf32>
    %cst_11 = arith.constant 1.05070102 : f32
    %27 = vector.broadcast %cst_11 : f32 to vector<8x128xf32>
    %28 = arith.mulf %27, %26 : vector<8x128xf32>
    %c0_12 = arith.constant 0 : index
    %c0_13 = arith.constant 0 : index
    %29 = vector.load %arg6[%c0_12, %c0_13] : memref<8x128xf32, #tpu.memory_space<vmem>>, vector<8x128xf32>
    tpu.vector_store %arg6[%c0_12, %c0_13], %28 {strides = array<i32>} : memref<8x128xf32, #tpu.memory_space<vmem>>, vector<8x128xf32>,
    %c0_14 = arith.constant 0 : index
    %c0_15 = arith.constant 0 : index
    %30 = vector.load %arg2[%c0_14, %c0_15] : memref<8x256xf32, #tpu.memory_space<vmem>>, vector<8x256xf32>
    %cst_16 = arith.constant dense<0xFF800000> : vector<8xf32>
    %31 = vector.multi_reduction <maximumf>, %30, %cst_16 [1] : vector<8x256xf32> to vector<8xf32>
    %32 = vector.shape_cast %31 : vector<8xf32> to vector<8x1xf32>
    %33 = vector.broadcast %32 : vector<8x1xf32> to vector<8x256xf32>
    %34 = arith.subf %30, %33 : vector<8x256xf32>
    %35 = math.exp %34 : vector<8x256xf32>
    %cst_17 = arith.constant dense<0.000000e+00> : vector<8xf32>
    %36 = vector.multi_reduction <add>, %35, %cst_17 [1] : vector<8x256xf32> to vector<8xf32>
    %37 = vector.shape_cast %36 : vector<8xf32> to vector<8x1xf32>
    %38 = tpu.reciprocal %37 {approx = true} : vector<8x1xf32> -> vector<8x1xf32>
    %39 = arith.truncf %35 : vector<8x256xf32> to vector<8x256xbf16>
    %cst_18 = arith.constant dense<0.000000e+00> : vector<8x128xf32>
    %40 = tpu.matmul %39, %0, %cst_18 {dimension_numbers = #tpu.dot_dimension_numbers<[1], [0], [0], [1], [0, 0, 1, 1], [], []>} : vector<8x256xbf16>, vector<256x128xbf16>, vector<8x128xf32> -> vector<8x128xf32>
    %41 = vector.broadcast %38 : vector<8x1xf32> to vector<8x128xf32>
    %42 = arith.mulf %40, %41 : vector<8x128xf32>
    %43 = vector.broadcast %1 : vector<1x128xf32> to vector<8x128xf32>
    %44 = arith.addf %42, %43 : vector<8x128xf32>
    %cst_19 = arith.constant 0.000000e+00 : f32
    %45 = vector.broadcast %cst_19 : f32 to vector<8x128xf32>
    %46 = arith.minimumf %44, %45 : vector<8x128xf32>
    %cst_20 = arith.constant 0.000000e+00 : f32
    %47 = vector.broadcast %cst_20 : f32 to vector<8x128xf32>
    %48 = arith.cmpf ogt, %44, %47 : vector<8x128xf32>
    %49 = math.exp %46 : vector<8x128xf32>
    %cst_21 = arith.constant 1.000000e+00 : f32
    %50 = vector.broadcast %cst_21 : f32 to vector<8x128xf32>
    %51 = arith.subf %49, %50 : vector<8x128xf32>
    %cst_22 = arith.constant 1.67326319 : f32
    %52 = vector.broadcast %cst_22 : f32 to vector<8x128xf32>
    %53 = arith.mulf %52, %51 : vector<8x128xf32>
    %54 = arith.select %48, %44, %53 : vector<8x128xi1>, vector<8x128xf32>
    %cst_23 = arith.constant 1.05070102 : f32
    %55 = vector.broadcast %cst_23 : f32 to vector<8x128xf32>
    %56 = arith.mulf %55, %54 : vector<8x128xf32>
    %c0_24 = arith.constant 0 : index
    %c0_25 = arith.constant 0 : index
    %57 = vector.load %arg7[%c0_24, %c0_25] : memref<8x128xf32, #tpu.memory_space<vmem>>, vector<8x128xf32>
    tpu.vector_store %arg7[%c0_24, %c0_25], %56 {strides = array<i32>} : memref<8x128xf32, #tpu.memory_space<vmem>>, vector<8x128xf32>,
    %c0_26 = arith.constant 0 : index
    %c0_27 = arith.constant 0 : index
    %58 = vector.load %arg3[%c0_26, %c0_27] : memref<8x256xf32, #tpu.memory_space<vmem>>, vector<8x256xf32>
    %cst_28 = arith.constant dense<0xFF800000> : vector<8xf32>
    %59 = vector.multi_reduction <maximumf>, %58, %cst_28 [1] : vector<8x256xf32> to vector<8xf32>
    %60 = vector.shape_cast %59 : vector<8xf32> to vector<8x1xf32>
    %61 = vector.broadcast %60 : vector<8x1xf32> to vector<8x256xf32>
    %62 = arith.subf %58, %61 : vector<8x256xf32>
    %63 = math.exp %62 : vector<8x256xf32>
    %cst_29 = arith.constant dense<0.000000e+00> : vector<8xf32>
    %64 = vector.multi_reduction <add>, %63, %cst_29 [1] : vector<8x256xf32> to vector<8xf32>
    %65 = vector.shape_cast %64 : vector<8xf32> to vector<8x1xf32>
    %66 = tpu.reciprocal %65 {approx = true} : vector<8x1xf32> -> vector<8x1xf32>
    %67 = arith.truncf %63 : vector<8x256xf32> to vector<8x256xbf16>
    %cst_30 = arith.constant dense<0.000000e+00> : vector<8x128xf32>
    %68 = tpu.matmul %67, %0, %cst_30 {dimension_numbers = #tpu.dot_dimension_numbers<[1], [0], [0], [1], [0, 0, 1, 1], [], []>} : vector<8x256xbf16>, vector<256x128xbf16>, vector<8x128xf32> -> vector<8x128xf32>
    %69 = vector.broadcast %66 : vector<8x1xf32> to vector<8x128xf32>
    %70 = arith.mulf %68, %69 : vector<8x128xf32>
    %71 = vector.broadcast %1 : vector<1x128xf32> to vector<8x128xf32>
    %72 = arith.addf %70, %71 : vector<8x128xf32>
    %cst_31 = arith.constant 0.000000e+00 : f32
    %73 = vector.broadcast %cst_31 : f32 to vector<8x128xf32>
    %74 = arith.minimumf %72, %73 : vector<8x128xf32>
    %cst_32 = arith.constant 0.000000e+00 : f32
    %75 = vector.broadcast %cst_32 : f32 to vector<8x128xf32>
    %76 = arith.cmpf ogt, %72, %75 : vector<8x128xf32>
    %77 = math.exp %74 : vector<8x128xf32>
    %cst_33 = arith.constant 1.000000e+00 : f32
    %78 = vector.broadcast %cst_33 : f32 to vector<8x128xf32>
    %79 = arith.subf %77, %78 : vector<8x128xf32>
    %cst_34 = arith.constant 1.67326319 : f32
    %80 = vector.broadcast %cst_34 : f32 to vector<8x128xf32>
    %81 = arith.mulf %80, %79 : vector<8x128xf32>
    %82 = arith.select %76, %72, %81 : vector<8x128xi1>, vector<8x128xf32>
    %cst_35 = arith.constant 1.05070102 : f32
    %83 = vector.broadcast %cst_35 : f32 to vector<8x128xf32>
    %84 = arith.mulf %83, %82 : vector<8x128xf32>
    %c0_36 = arith.constant 0 : index
    %c0_37 = arith.constant 0 : index
    %85 = vector.load %arg8[%c0_36, %c0_37] : memref<8x128xf32, #tpu.memory_space<vmem>>, vector<8x128xf32>
    tpu.vector_store %arg8[%c0_36, %c0_37], %84 {strides = array<i32>} : memref<8x128xf32, #tpu.memory_space<vmem>>, vector<8x128xf32>,
    return
  }
  func.func @transform_0(%arg0: i32) -> (i32, i32) {
    %c0_i32 = arith.constant 0 : i32
    %c0_i32_0 = arith.constant 0 : i32
    return %arg0, %c0_i32 : i32, i32
  }
  func.func @transform_1(%arg0: i32) -> (i32, i32) {
    %c0_i32 = arith.constant 0 : i32
    %c0_i32_0 = arith.constant 0 : i32
    return %arg0, %c0_i32 : i32, i32
  }
  func.func @transform_2(%arg0: i32) -> (i32, i32) {
    %c0_i32 = arith.constant 0 : i32
    %c0_i32_0 = arith.constant 0 : i32
    return %arg0, %c0_i32 : i32, i32
  }
  func.func @transform_3(%arg0: i32) -> (i32, i32) {
    %c0_i32 = arith.constant 0 : i32
    %c0_i32_0 = arith.constant 0 : i32
    %c0_i32_1 = arith.constant 0 : i32
    return %c0_i32, %c0_i32_0 : i32, i32
  }
  func.func @transform_4(%arg0: i32) -> (i32, i32) {
    %c0_i32 = arith.constant 0 : i32
    %c0_i32_0 = arith.constant 0 : i32
    %c0_i32_1 = arith.constant 0 : i32
    return %c0_i32, %c0_i32_0 : i32, i32
  }
  func.func @transform_5(%arg0: i32) -> (i32, i32) {
    %c0_i32 = arith.constant 0 : i32
    %c0_i32_0 = arith.constant 0 : i32
    return %arg0, %c0_i32 : i32, i32
  }
  func.func @transform_6(%arg0: i32) -> (i32, i32) {
    %c0_i32 = arith.constant 0 : i32
    %c0_i32_0 = arith.constant 0 : i32
    return %arg0, %c0_i32 : i32, i32
  }
  func.func @transform_7(%arg0: i32) -> (i32, i32) {
    %c0_i32 = arith.constant 0 : i32
    %c0_i32_0 = arith.constant 0 : i32
    return %arg0, %c0_i32 : i32, i32
  }
}

</mosaic_0001>

<bundles_post_ra>
// kernel: tpu_custom_call.1
= control target key start
LH: loop header
LB: loop body
LE: loop exit
PB: predicated region body
PF: predicated region fallthrough
CT: control target
= control target key end

     0   :  { %13 = vsyncpa [#allocation3], 0  ;;  %s1004_s0 = inlined_call_operand.hbm [shape: f32[8,256], index: 0, kind: input, shape index: {}]   ;;  %s1005_s1 = inlined_call_operand.hbm [shape: f32[8,256], index: 1, kind: input, shape index: {}]   ;;  %s1006_s2 = inlined_call_operand.hbm [shape: f32[8,256], index: 2, kind: input, shape index: {}]   ;;  %s1007_s3 = inlined_call_operand.hbm [shape: bf16[256,128], index: 3, kind: input, shape index: {}]   ;;  %s1008_s4 = inlined_call_operand.vmem [shape: f32[1,128], index: 4, kind: input, shape index: {}]   ;;  %s1009_s5 = inlined_call_operand.hbm [shape: f32[8,128], index: 5, kind: output, shape index: {0}]   ;;  %s1010_s6 = inlined_call_operand.hbm [shape: f32[8,128], index: 6, kind: output, shape index: {1}]   ;;  %s1011_s7 = inlined_call_operand.hbm [shape: f32[8,128], index: 7, kind: output, shape index: {2}]  }
   0x1   :  { %14 = vsyncpa [#allocation6], 0 }
   0x2   :  { %15 = vsyncpa [#allocation9], 0 }
   0x3   :  { %16 = vsyncpa [#allocation4], 0 }
   0x4   :  { %17 = vsyncpa [#allocation12], 0  ;;  %s757_s24 = smov [#allocation5]   ;;  %s758_s26 = smov [#allocation2]  }
   0x5   :  { %s34_s25 = sshll.u32 %s757_s24, 4  ;;  %s24_s27 = sshll.u32 %s758_s26, 4  ;;  %s35_s25 = int_to_ptr.vmem [resolvable:$true] %s34_s25  ;;  %s25_s27 = int_to_ptr.vmem [resolvable:$true] %s24_s27 }
   0x6   :  { %s593_s30 = scalar_lea.hbm %s1005_s1, 256 }
   0x7   :  { %p594_p0 = scmp.ne.s32.totalorder %s1005_s1, %s593_s30  ;;  %p597_p1 = scmp.lt.u32.totalorder %s593_s30, %s1005_s1 }
   0x9   :  { %p599_p2 = pnand %p597_p1, %p594_p0 }
   0xb   :  { %602 = shalt.err (!%p599_p2)
}
   0xc   :  { %s603_s12 = scalar_lea.vmem %s35_s25, 256  ;;  %p608_p4 = scmp.lt.s32.totalorder %s35_s25, %s35_s25 }
   0xd   :  { %p604_p3 = scmp.ne.s32.totalorder %s35_s25, %s603_s12  ;;  %p609_p5 = scmp.lt.s32.totalorder %s603_s12, %s603_s12 }
   0xf   :  { %p610_p6 = por %p609_p5, %p608_p4 }
  0x11   :  { %p611_p7 = pnand %p610_p6, %p604_p3 }
  0x13   :  { %614 = shalt.err (!%p611_p7)
}
  0x14   :  { %37 = dma.hbm_to_vmem [thread:$0]  %s1005_s1, 256, %s35_s25, [#allocation6]  }
  0x15   :  { %s615_s17 = scalar_lea.hbm %s1004_s0, 256 }
  0x16   :  { %p616_p8 = scmp.ne.s32.totalorder %s1004_s0, %s615_s17  ;;  %p619_p9 = scmp.lt.u32.totalorder %s615_s17, %s1004_s0 }
  0x18   :  { %p621_p10 = pnand %p619_p9, %p616_p8 }
  0x1a   :  { %624 = shalt.err (!%p621_p10)
}
  0x1b   :  { %s625_s22 = scalar_lea.vmem %s25_s27, 256  ;;  %p630_p12 = scmp.lt.s32.totalorder %s25_s27, %s25_s27 }
  0x1c   :  { %p626_p11 = scmp.ne.s32.totalorder %s25_s27, %s625_s22  ;;  %p631_p13 = scmp.lt.s32.totalorder %s625_s22, %s625_s22 }
  0x1e   :  { %p632_p0 = por %p631_p13, %p630_p12 }
  0x20   :  { %p633_p1 = pnand %p632_p0, %p626_p11 }
  0x22   :  { %636 = shalt.err (!%p633_p1)
}
  0x23   :  { %27 = dma.hbm_to_vmem [thread:$0]  %s1004_s0, 256, %s25_s27, [#allocation3]  }
  0x24   :  { %s759_s24 = smov [#allocation7]   ;;  %s760_s26 = smov [#allocation8]  }
  0x25   :  { %s44_s25 = sshll.u32 %s759_s24, 4  ;;  %s53_s28 = sshll.u32 %s760_s26, 4  ;;  %s45_s25 = int_to_ptr.vmem [resolvable:$true] %s44_s25  ;;  %s830_s28 = int_to_ptr.vmem [resolvable:$true] %s53_s28 }
  0x26   :  { %s637_s8 = scalar_lea.hbm %s1006_s2, 256 }
  0x27   :  { %p638_p2 = scmp.ne.s32.totalorder %s1006_s2, %s637_s8  ;;  %p641_p3 = scmp.lt.u32.totalorder %s637_s8, %s1006_s2 }
  0x29   :  { %p643_p4 = pnand %p641_p3, %p638_p2 }
  0x2b   :  { %646 = shalt.err (!%p643_p4)
}
  0x2c   :  { %s647_s0 = scalar_lea.vmem %s45_s25, 256  ;;  %p652_p6 = scmp.lt.s32.totalorder %s45_s25, %s45_s25 }
  0x2d   :  { %p648_p5 = scmp.ne.s32.totalorder %s45_s25, %s647_s0  ;;  %p653_p7 = scmp.lt.s32.totalorder %s647_s0, %s647_s0 }
  0x2f   :  { %p654_p8 = por %p653_p7, %p652_p6 }
  0x31   :  { %p655_p9 = pnand %p654_p8, %p648_p5 }
  0x33   :  { %658 = shalt.err (!%p655_p9)
}
  0x34   :  { %47 = dma.hbm_to_vmem [thread:$0]  %s1006_s2, 256, %s45_s25, [#allocation6]  }
  0x35   :  { %s659_s16 = scalar_lea.hbm %s1007_s3, 2048 }
  0x36   :  { %p660_p10 = scmp.ne.s32.totalorder %s1007_s3, %s659_s16  ;;  %p663_p11 = scmp.lt.u32.totalorder %s659_s16, %s1007_s3 }
  0x38   :  { %p665_p12 = pnand %p663_p11, %p660_p10 }
  0x3a   :  { %668 = shalt.err (!%p665_p12)
}
  0x3b   :  { %s669_s21 = scalar_lea.vmem %s830_s28, 2048  ;;  %p674_p0 = scmp.lt.s32.totalorder %s830_s28, %s830_s28 }
  0x3c   :  { %p670_p13 = scmp.ne.s32.totalorder %s830_s28, %s669_s21  ;;  %p675_p1 = scmp.lt.s32.totalorder %s669_s21, %s669_s21 }
  0x3e   :  { %p676_p2 = por %p675_p1, %p674_p0 }
  0x40   :  { %p677_p3 = pnand %p676_p2, %p670_p13 }
  0x42   :  { %680 = shalt.err (!%p677_p3)
}
  0x43   :  { %s761_s2 = smov 64   ;;  %s762_s22 = smov 4  }
  0x44   :  { %59 = dma.hbm_to_vmem [thread:$0]  %s1007_s3, 2048, %s830_s28, [#allocation9], %s761_s2, %s761_s2, %s762_s22  }
  0x45   :  { %747 = dma.done.wait [#allocation3], 256  }
  0x46   :  { %748 = vsyncadd [#allocation3], 4294967040 }
  0x47   :  { %749 = dma.done.wait [#allocation6], 512  }
  0x48   :  { %750 = vsyncadd [#allocation6], 4294966784 }
  0x49   :  { %751 = dma.done.wait [#allocation9], 2048  }
  0x4a   :  { %752 = vsyncadd [#allocation9], 4294965248  ;;  %v861_v0 = vld [vmem:[#allocation2] sm:$0xff]  ;;  %v863_v1 = vld [vmem:[#allocation2 + $0x8] sm:$0xff]  ;;  %s764_s26 = smov [#allocation11]  }
  0x4b   :  { %v865_v2 = vld [vmem:[#allocation5] sm:$0xff]  ;;  %v110_v3 = vmax.f32 %v861_v0, %v863_v1  ;;  %v869_v4 = vld [vmem:[#allocation5 + $0x8] sm:$0xff]  ;;  %v871_v5 = vld [vmem:[#allocation7] sm:$0xff]  ;;  %s430_s28 = sshll.u32 %s764_s26, 4  ;;  %s431_s28 = int_to_ptr.vmem [resolvable:$true] %s430_s28 }
  0x4c   :  { %v873_v6 = vld [vmem:[#allocation7 + $0x8] sm:$0xff]  ;;  %v553_v8 = vld [vmem:[#allocation8 + $0x40] sm:$0xff]   ;;  %v280_v9 = vmax.f32 %v865_v2, %v869_v4  ;;  %v881_v11 = vld [vmem:[#allocation8 + $0x48] sm:$0xff]  }
  0x4d   :  { %v348_v7 = vmax.f32 %v871_v5, %v873_v6  ;;  %111 = vmax.xlane.f32.xlu0 %v110_v3  ;;  %v879_v10 = vld [vmem:[#allocation8] sm:$0xff]   ;;  %478 = vmatprep.subr.bf16.mxu0 %v553_v8  ;;  %v884_v12 = vld [vmem:[#allocation8 + $0x8] sm:$0xff]   ;;  %v888_v13 = vld [vmem:[#allocation8 + $0x50] sm:$0xff]  }
  0x4e   :  { %479 = vmatpush3.bf16.msra.mxu0 %v879_v10  ;;  %500 = vmatprep.subr.bf16.mxu1 %v553_v8  ;;  %v891_v14 = vld [vmem:[#allocation8 + $0x10] sm:$0xff]   ;;  %v894_v15 = vld [vmem:[#allocation8 + $0x58] sm:$0xff]   ;;  %v906_v17 = vld [vmem:[#allocation8 + $0x60] sm:$0xff]  }
  0x4f   :  { %349 = vmax.xlane.f32.xlu1 %v348_v7  ;;  %480 = vmatprep.subr.bf16.mxu0 %v881_v11  ;;  %v898_v16 = vld [vmem:[#allocation8 + $0x18] sm:$0xff]   ;;  %v908_v18 = vld [vmem:[#allocation8 + $0x20] sm:$0xff]   ;;  %v914_v19 = vld [vmem:[#allocation8 + $0x68] sm:$0xff]  }
  0x50   :  { %501 = vmatpush3.bf16.msra.mxu1 %v879_v10  ;;  %v916_v20 = vld [vmem:[#allocation8 + $0x28] sm:$0xff]   ;;  %v922_v21 = vld [vmem:[#allocation8 + $0x70] sm:$0xff]   ;;  %v927_v23 = vld [vmem:[#allocation8 + $0x78] sm:$0xff]  }
  0x51   :  { %281 = vmax.xlane.f32.xlu0 %v280_v9  ;;  %502 = vmatprep.subr.bf16.mxu1 %v881_v11  ;;  %v924_v22 = vld [vmem:[#allocation8 + $0x30] sm:$0xff]   ;;  %v932_v24 = vld [vmem:[#allocation8 + $0x38] sm:$0xff]  }
  0x52   :  { %481 = vmatpush3.bf16.msra.mxu0 %v884_v12  ;;  %v963_v62 = vld [vmem:[%s1008_s4] ss:$0 sm:$0xff]  ;;  %s763_s4 = smov [#allocation10]  }
  0x53   :  { %482 = vmatprep.subr.bf16.mxu0 %v888_v13  ;;  %s420_s25 = sshll.u32 %s763_s4, 4  ;;  %s421_s25 = int_to_ptr.vmem [resolvable:$true] %s420_s25 }
  0x54   :  { %503 = vmatpush3.bf16.msra.mxu1 %v884_v12  ;;  %s681_s29 = scalar_lea.vmem %s421_s25, 128  ;;  %p686_p5 = scmp.lt.s32.totalorder %s421_s25, %s421_s25 }
  0x55   :  { %504 = vmatprep.subr.bf16.mxu1 %v888_v13  ;;  %p682_p4 = scmp.ne.s32.totalorder %s421_s25, %s681_s29  ;;  %p687_p6 = scmp.lt.s32.totalorder %s681_s29, %s681_s29 }
  0x56   :  { %483 = vmatpush3.bf16.msra.mxu0 %v891_v14 }
  0x57   :  { %484 = vmatprep.subr.bf16.mxu0 %v894_v15  ;;  %p688_p7 = por %p687_p6, %p686_p5 }
  0x58   :  { %505 = vmatpush3.bf16.msra.mxu1 %v891_v14 }
  0x59   :  { %506 = vmatprep.subr.bf16.mxu1 %v894_v15  ;;  %p689_p8 = pnand %p688_p7, %p682_p4 }
  0x5a   :  { %485 = vmatpush3.bf16.msra.mxu0 %v898_v16 }
  0x5b   :  { %486 = vmatprep.subr.bf16.mxu0 %v906_v17 }
  0x5c   :  { %507 = vmatpush3.bf16.msra.mxu1 %v898_v16 }
  0x5d   :  { %508 = vmatprep.subr.bf16.mxu1 %v906_v17 }
  0x5e   :  { %487 = vmatpush3.bf16.msra.mxu0 %v908_v18 }
  0x5f   :  { %488 = vmatprep.subr.bf16.mxu0 %v914_v19 }
  0x60   :  { %509 = vmatpush3.bf16.msra.mxu1 %v908_v18 }
  0x61   :  { %510 = vmatprep.subr.bf16.mxu1 %v914_v19 }
  0x62   :  { %489 = vmatpush3.bf16.msra.mxu0 %v916_v20 }
  0x63   :  { %490 = vmatprep.subr.bf16.mxu0 %v922_v21 }
  0x64   :  { %511 = vmatpush3.bf16.msra.mxu1 %v916_v20 }
  0x65   :  { %512 = vmatprep.subr.bf16.mxu1 %v922_v21 }
  0x66   :  { %491 = vmatpush3.bf16.msra.mxu0 %v924_v22 }
  0x67   :  { %492 = vmatprep.subr.bf16.mxu0 %v927_v23 }
  0x68   :  { %513 = vmatpush3.bf16.msra.mxu1 %v924_v22 }
  0x69   :  { %514 = vmatprep.subr.bf16.mxu1 %v927_v23 }
  0x6a   :  { %493 = vmatpush3.bf16.msra.mxu0 %v932_v24 }
  0x6b   :  { %522 = vmatprep.subr.bf16.mxu0 %v553_v8 }
  0x6c   :  { %515 = vmatpush3.bf16.msra.mxu1 %v932_v24 }
  0xda   :  { %v112_v25 = vpop.xlane.xlu0 %111 }
  0xdb   :  { %v113_v26 = vsub.f32 %v861_v0, %v112_v25  ;;  %v114_v27 = vsub.f32 %v863_v1, %v112_v25 }
  0xdc   :  { %v350_v28 = vpop.xlane.xlu1 %349 }
  0xdd   :  { %v351_v29 = vsub.f32 %v871_v5, %v350_v28  ;;  %v352_v30 = vsub.f32 %v873_v6, %v350_v28  ;;  %v115_v31 = vmul.f32 1.442695, %v113_v26  ;;  %v117_v32 = vmul.f32 1.442695, %v114_v27 }
  0xde   :  { %v282_v33 = vpop.xlane.xlu0 %281 }
  0xdf   :  { %v353_v34 = vmul.f32 1.442695, %v351_v29  ;;  %v355_v35 = vmul.f32 1.442695, %v352_v30  ;;  %569 = vpow2.f32 %v115_v31  ;;  %v283_v36 = vsub.f32 %v865_v2, %v282_v33 }
  0xe0   :  { %v284_v37 = vsub.f32 %v869_v4, %v282_v33  ;;  %571 = vpow2.f32 %v117_v32 }
  0xe1   :  { %v285_v38 = vmul.f32 1.442695, %v283_v36  ;;  %573 = vpow2.f32 %v353_v34 }
  0xe2   :  { %v287_v39 = vmul.f32 1.442695, %v284_v37  ;;  %575 = vpow2.f32 %v355_v35 }
  0xe3   :  { %577 = vpow2.f32 %v285_v38 }
  0xe4   :  { %579 = vpow2.f32 %v287_v39 }
  0xe9   :  { %v570_v40 = vpop.eup %569 }
  0xea   :  { %v572_v41 = vpop.eup %571  ;;  %v123_v42 = vpack.c.bf16 %v570_v40, %v570_v40 }
  0xeb   :  { %v574_v43 = vpop.eup %573  ;;  %v124_v44 = vpack.c.bf16 %v572_v41, %v572_v41  ;;  %v119_v45 = vadd.f32 %v572_v41, %v570_v40 }
  0xec   :  { %v576_v46 = vpop.eup %575  ;;  %v361_v54 = vpack.c.bf16 %v574_v43, %v574_v43 }
  0xed   :  { %v578_v47 = vpop.eup %577  ;;  %253 = vmatprep.mubr.bf16.mxu0 %v124_v44  ;;  %120 = vadd.xlane.f32.xlu0 %v119_v45  ;;  %v362_v48 = vpack.c.bf16 %v576_v46, %v576_v46  ;;  %v357_v53 = vadd.f32 %v576_v46, %v574_v43 }
  0xee   :  { %v580_v49 = vpop.eup %579  ;;  %254 = vmatmul.mubr.bf16.vlgmr.msra.gmra.mrb[0].mxu0 %v123_v42  ;;  %v293_v50 = vpack.c.bf16 %v578_v47, %v578_v47 }
  0xef   :  { %523 = vmatpush3.bf16.msra.mxu0 %v879_v10  ;;  %v294_v51 = vpack.c.bf16 %v580_v49, %v580_v49  ;;  %v289_v52 = vadd.f32 %v580_v49, %v578_v47  ;;  %395 = vmatprep.mubr.bf16.mxu0 %v362_v48 }
  0xf0   :  { %524 = vmatprep.subr.bf16.mxu0 %v881_v11 }
  0xf1   :  { %327 = vmatprep.mubr.bf16.mxu1 %v294_v51  ;;  %290 = vadd.xlane.f32.xlu1 %v289_v52 }
  0xf2   :  { %328 = vmatmul.mubr.bf16.vlgmr.msra.gmra.mrb[0].mxu1 %v293_v50 }
  0xf3   :  { %525 = vmatpush3.bf16.msra.mxu0 %v884_v12 }
  0xf4   :  { %526 = vmatprep.subr.bf16.mxu0 %v888_v13 }
  0xf5   :  { %358 = vadd.xlane.f32.xlu1 %v357_v53 }
  0xf7   :  { %527 = vmatpush3.bf16.msra.mxu0 %v891_v14 }
  0xf8   :  { %528 = vmatprep.subr.bf16.mxu0 %v894_v15 }
  0xfb   :  { %529 = vmatpush3.bf16.msra.mxu0 %v898_v16 }
  0xfc   :  { %530 = vmatprep.subr.bf16.mxu0 %v906_v17 }
  0xff   :  { %531 = vmatpush3.bf16.msra.mxu0 %v908_v18 }
 0x100   :  { %532 = vmatprep.subr.bf16.mxu0 %v914_v19 }
 0x103   :  { %533 = vmatpush3.bf16.msra.mxu0 %v916_v20 }
 0x104   :  { %534 = vmatprep.subr.bf16.mxu0 %v922_v21 }
 0x107   :  { %535 = vmatpush3.bf16.msra.mxu0 %v924_v22 }
 0x108   :  { %536 = vmatprep.subr.bf16.mxu0 %v927_v23 }
 0x10b   :  { %537 = vmatpush3.bf16.msra.mxu0 %v932_v24 }
 0x10e   :  { %396 = vmatmul.mubr.bf16.vlgmr.msra.gmra.mrb[4].mxu0 %v361_v54 }
 0x17a   :  { %v121_v55 = vpop.xlane.xlu0 %120 }
 0x17b   :  { %581 = vrcp.f32 %v121_v55 }
 0x17e   :  { %v291_v56 = vpop.xlane.xlu1 %290 }
 0x17f   :  { %583 = vrcp.f32 %v291_v56 }
 0x182   :  { %v359_v15 = vpop.xlane.xlu1 %358 }
 0x185   :  { %v582_v61 = vpop.eup %581 }
 0x189   :  { %v584_v6 = vpop.eup %583 }
 0x1c1   :  { %v494_v57 = vpop.f32.mrb[0].mxu0 }
 0x1c2   :  { %v495_v58 = vpop.f32.mrb[1].mxu0 }
 0x1c3   :  { %v496_v59 = vadd.f32 %v495_v58, %v494_v57  ;;  %v497_v60 = vpop.f32.mrb[2].mxu0 }
 0x1c4   :  { %v498_v63 = vpop.f32.mrb[3].mxu0 }
 0x1c5   :  { %v261_v0 = vmul.f32 %v582_v61, %v496_v59  ;;  %v516_v1 = vpop.f32.mrb[0].mxu1 }
 0x1c6   :  { %v517_v2 = vpop.f32.mrb[1].mxu1 }
 0x1c7   :  { %v268_v3 = vadd.f32 %v963_v62, %v261_v0  ;;  %v518_v4 = vadd.f32 %v517_v2, %v516_v1  ;;  %v519_v5 = vpop.f32.mrb[2].mxu1 }
 0x1c8   :  { %v520_v7 = vpop.f32.mrb[3].mxu1 }
 0x1c9   :  { %v269_v8 = vmin.f32 %v268_v3, 0.0  ;;  %v335_v9 = vmul.f32 %v584_v6, %v518_v4  ;;  %vm270_vm0 = vcmp.gt.f32.partialorder %v268_v3, 0.0 }
 0x1cb   :  { %v271_v10 = vmul.f32 1.442695, %v269_v8  ;;  %v336_v11 = vadd.f32 %v963_v62, %v335_v9 }
 0x1cd   :  { %585 = vpow2.f32 %v271_v10  ;;  %v337_v12 = vmin.f32 %v336_v11, 0.0  ;;  %vm338_vm1 = vcmp.gt.f32.partialorder %v336_v11, 0.0 }
 0x1cf   :  { %v339_v13 = vmul.f32 1.442695, %v337_v12 }
 0x1d1   :  { %587 = vpow2.f32 %v339_v13 }
 0x1d2   :  { %589 = vrcp.f32 %v359_v15 }
 0x1d7   :  { %v586_v14 = vpop.eup %585 }
 0x1d8   :  { %v475_v16 = vadd.f32 -1.0, %v586_v14 }
 0x1da   :  { %v274_v17 = vmul.f32 1.6732632, %v475_v16 }
 0x1db   :  { %v588_v18 = vpop.eup %587 }
 0x1dc   :  { %v476_v19 = vadd.f32 -1.0, %v588_v18  ;;  %v275_v20 = vsel %vm270_vm0, %v268_v3, %v274_v17 }
 0x1dd   :  { %v276_v21 = vmul.f32 1.050701, %v275_v20 }
 0x1de   :  { %v342_v22 = vmul.f32 1.6732632, %v476_v19 }
 0x1df   :  { %277 = vst [vmem:[#allocation10] sm:$0xff] %v276_v21 }
 0x1e0   :  { %v343_v23 = vsel %vm338_vm1, %v336_v11, %v342_v22 }
 0x1e1   :  { %692 = shalt.err (!%p689_p8)
}
 0x1e2   :  { %s693_s9 = scalar_lea.hbm %s1009_s5, 128 }
 0x1e3   :  { %p694_p9 = scmp.ne.s32.totalorder %s1009_s5, %s693_s9  ;;  %p697_p10 = scmp.lt.u32.totalorder %s693_s9, %s1009_s5 }
 0x1e5   :  { %p699_p11 = pnand %p697_p10, %p694_p9 }
 0x1e7   :  { %702 = shalt.err (!%p699_p11)
}
 0x1e8   :  { %423 = dma.vmem_to_hbm [thread:$0]  %s421_s25, 128, %s1009_s5, [#allocation4]   ;;  %v538_v24 = vpop.f32.mrb[4].mxu0  ;;  %v344_v25 = vmul.f32 1.050701, %v343_v23  ;;  %v590_v29 = vpop.eup %589 }
 0x1e9   :  { %v539_v26 = vpop.f32.mrb[5].mxu0  ;;  %s703_s14 = scalar_lea.vmem %s431_s28, 128  ;;  %p708_p13 = scmp.lt.s32.totalorder %s431_s28, %s431_s28 }
 0x1ea   :  { %v540_v27 = vadd.f32 %v539_v26, %v538_v24  ;;  %v541_v28 = vpop.f32.mrb[6].mxu0  ;;  %345 = vst [vmem:[#allocation11] sm:$0xff] %v344_v25  ;;  %p704_p12 = scmp.ne.s32.totalorder %s431_s28, %s703_s14  ;;  %p709_p0 = scmp.lt.s32.totalorder %s703_s14, %s703_s14 }
 0x1eb   :  { %v542_v30 = vpop.f32.mrb[7].mxu0 }
 0x1ec   :  { %p710_p1 = por %p709_p0, %p708_p13 }
 0x1ee   :  { %p711_p2 = pnand %p710_p1, %p704_p12 }
 0x1f0   :  { %714 = shalt.err (!%p711_p2)
}
 0x1f1   :  { %s715_s5 = scalar_lea.hbm %s1010_s6, 128 }
 0x1f2   :  { %p716_p3 = scmp.ne.s32.totalorder %s1010_s6, %s715_s5  ;;  %p719_p4 = scmp.lt.u32.totalorder %s715_s5, %s1010_s6 }
 0x1f4   :  { %p721_p5 = pnand %p719_p4, %p716_p3 }
 0x1f6   :  { %724 = shalt.err (!%p721_p5)
}
 0x1f7   :  { %433 = dma.vmem_to_hbm [thread:$0]  %s431_s28, 128, %s1010_s6, [#allocation12]   ;;  %v403_v31 = vmul.f32 %v590_v29, %v540_v27 }
 0x1f8   :  { %s765_s22 = smov [#allocation13]  }
 0x1f9   :  { %v404_v32 = vadd.f32 %v963_v62, %v403_v31  ;;  %s440_s1 = sshll.u32 %s765_s22, 4  ;;  %s441_s1 = int_to_ptr.vmem [resolvable:$true] %s440_s1 }
 0x1fa   :  { %s725_s23 = scalar_lea.vmem %s441_s1, 128  ;;  %p730_p7 = scmp.lt.s32.totalorder %s441_s1, %s441_s1 }
 0x1fb   :  { %v405_v33 = vmin.f32 %v404_v32, 0.0  ;;  %vm406_vm2 = vcmp.gt.f32.partialorder %v404_v32, 0.0  ;;  %p726_p6 = scmp.ne.s32.totalorder %s441_s1, %s725_s23  ;;  %p731_p8 = scmp.lt.s32.totalorder %s725_s23, %s725_s23 }
 0x1fd   :  { %v407_v34 = vmul.f32 1.442695, %v405_v33  ;;  %p732_p9 = por %p731_p8, %p730_p7 }
 0x1ff   :  { %591 = vpow2.f32 %v407_v34  ;;  %p733_p10 = pnand %p732_p9, %p726_p6 }
 0x209   :  { %v592_v35 = vpop.eup %591 }
 0x20a   :  { %v477_v36 = vadd.f32 -1.0, %v592_v35 }
 0x20c   :  { %v410_v37 = vmul.f32 1.6732632, %v477_v36 }
 0x20e   :  { %v411_v38 = vsel %vm406_vm2, %v404_v32, %v410_v37 }
 0x20f   :  { %v412_v39 = vmul.f32 1.050701, %v411_v38 }
 0x211   :  { %413 = vst [vmem:[#allocation13] sm:$0xff] %v412_v39 }
 0x212   :  { %736 = shalt.err (!%p733_p10)
}
 0x213   :  { %s737_s24 = scalar_lea.hbm %s1011_s7, 128 }
 0x214   :  { %p738_p11 = scmp.ne.s32.totalorder %s1011_s7, %s737_s24  ;;  %p741_p12 = scmp.lt.u32.totalorder %s737_s24, %s1011_s7 }
 0x216   :  { %p743_p13 = pnand %p741_p12, %p738_p11 }
 0x218   :  { %746 = shalt.err (!%p743_p13)
}
 0x219   :  { %443 = dma.vmem_to_hbm [thread:$0]  %s441_s1, 128, %s1011_s7, [#allocation12]  }
 0x21a   :  { %753 = dma.done.wait [#allocation4], 128  }
 0x21b   :  { %754 = vsyncadd [#allocation4], 4294967168 }
 0x21c   :  { %755 = dma.done.wait [#allocation12], 256  }
 0x21d   :  { %756 = vsyncadd [#allocation12], 4294967040 }
 0x21e   :  { %453 = vsyncpa [#allocation3], 1 }
 0x21f   :  { %454 = vsyncpa [#allocation6], 1 }
 0x220   :  { %455 = vsyncpa [#allocation9], 1 }
 0x221   :  { %456 = vsyncpa [#allocation4], 1 }
 0x222   :  { %457 = vsyncpa [#allocation12], 1 }

</bundles_post_ra>
